<compile_context>
chip_gen: v7x
topology: tpu7x:2x2x1
jax: 0.10.0
libtpu: 0.0.40
codegen_flags: <defaults>
</compile_context>

<pallas_src>
import numpy as np
import jax
import jax.numpy as jnp
from jax.experimental import pallas as pl
from jax.experimental.pallas import tpu as pltpu


# ----------------------------- plain-JAX glue --------------------------------
def generate_grid(size, positions, sigma):
    """JAX port of the torch generate_grid (linspace / cartesian_prod / cdist)."""
    ranges = [jnp.linspace(-1.0, 1.0, d) for d in size]
    mesh = jnp.meshgrid(*ranges, indexing="ij")                 # cartesian_prod order
    coords = jnp.stack(mesh, axis=-1).reshape(-1, len(size))    # (prod(size), len(size))
    diff = coords[:, None, :] - positions[None, :, :]           # (N, dim, len(size))
    dists = jnp.sqrt(jnp.sum(diff * diff, axis=-1))             # cdist, (N, dim)
    y = jnp.exp(-((dists / sigma) ** 2))
    return y.reshape(*size, positions.shape[0])


def prepare_params(y_flat, x_flat, o_matrix, bias, batch):
    """Parameter-only math, computed ONCE (not per forward call).

    weight = Y @ (O @ X^T)  and  out = inp @ weight^T + b, so
    weight^T = X @ (Y @ O)^T  ==  w_eff  (exact reassociation).
    """
    w_eff = x_flat @ (y_flat @ o_matrix).T          # (i_size, o_size), lane-dense
    bias_b = jnp.broadcast_to(bias[None, :], (batch, bias.shape[0]))  # (B, o_size)
    return jnp.asarray(w_eff, jnp.float32), jnp.asarray(bias_b, jnp.float32)


# ------------------------------- Pallas kernel --------------------------------
def xox_linear_kernel(inp_ref, w_ref, bias_ref, out_ref):
    # Single MXU matmul + vreg-aligned bias add:  (B, i_size) @ (i_size, o_size)
    out_ref[...] = (
        jnp.dot(inp_ref[...], w_ref[...], preferred_element_type=jnp.float32)
        + bias_ref[...]
    )


def pure_spatial_xox_linear(inp, w_eff, bias_b):
    """inp: (B, i_size); w_eff: (i_size, o_size); bias_b: (B, o_size) -> (B, o_size)."""
    B, i_size = inp.shape
    _, o_size = w_eff.shape

    vmem = pl.BlockSpec(memory_space=pltpu.MemorySpace.VMEM)
    flops = 2 * B * i_size * o_size
    bytes_accessed = 4 * (B * i_size + i_size * o_size + 2 * B * o_size)

    return pl.pallas_call(
        xox_linear_kernel,
        out_shape=jax.ShapeDtypeStruct((B, o_size), jnp.float32),
        in_specs=[vmem, vmem, vmem],
        out_specs=vmem,
        cost_estimate=pl.CostEstimate(
            flops=flops, transcendentals=0, bytes_accessed=bytes_accessed),
    )(inp, w_eff, bias_b)


# ---------------------------------- driver ------------------------------------
if __name__ == "__main__":
    key = jax.random.PRNGKey(0)
    k_ipos, k_opos, k_omat, k_inp = jax.random.split(key, 4)

    # Small shapes consistent with the module.
    i_shape = (16, 16)     # input spatial grid  -> i_size = 256
    o_shape = (8, 8)       # output spatial grid -> o_size = 64
    dim = 8
    sigma_1 = 0.5
    sigma_2 = 0.5
    batch = 2

    # Deterministic parameter init (mirrors the torch __init__ shapes).
    i_pos = jax.random.uniform(k_ipos, (dim, 2), jnp.float32, minval=-1.0, maxval=1.0)
    o_pos = jax.random.uniform(k_opos, (dim, 2), jnp.float32, minval=-1.0, maxval=1.0)
    i_grid = generate_grid(i_shape, i_pos, sigma_1)          # (*i_shape, dim)
    o_grid = generate_grid(o_shape, o_pos, sigma_2)          # (*o_shape, dim)
    i_size = int(np.prod(i_shape))
    o_size = int(np.prod(o_shape))
    o_matrix = (jax.random.normal(k_omat, (dim, dim), jnp.float32)
                * jnp.float32(1.0 / np.sqrt(3 * i_size)))
    bias = jnp.zeros((o_size,), jnp.float32)

    # flatten(end_dim=-2)
    x_flat = i_grid.reshape(-1, dim).astype(jnp.float32)     # (i_size, dim)
    y_flat = o_grid.reshape(-1, dim).astype(jnp.float32)     # (o_size, dim)

    inp = jax.random.normal(k_inp, (batch, i_size), jnp.float32)

    # Parameter-only prep: done once, reused across forward calls.
    w_eff, bias_b = prepare_params(y_flat, x_flat, o_matrix, bias, batch)
    w_eff = jax.block_until_ready(w_eff)

    out = pure_spatial_xox_linear(inp, w_eff, bias_b)
    out = jax.block_until_ready(out)

    # Reference (plain JAX, original association) for exact-semantics check.
    weight_ref = y_flat @ (o_matrix @ x_flat.T)              # (o_size, i_size)
    ref = inp @ weight_ref.T + bias                          # F.linear
    assert out.shape == (batch, o_size)
    assert jnp.allclose(out, ref, atol=1e-4, rtol=1e-4), "mismatch vs reference"

    print("KERNEL_OK")
</pallas_src>

<mosaic_0001>
module attributes {stable_mosaic.version = 11 : i64} {
  func.func @xox_linear_kernel(%arg0: memref<2x256xf32, #tpu.memory_space<vmem>>, %arg1: memref<256x64xf32, #tpu.memory_space<vmem>>, %arg2: memref<2x64xf32, #tpu.memory_space<vmem>>, %arg3: memref<2x64xf32, #tpu.memory_space<vmem>>) attributes {dimension_semantics = [], scalar_prefetch = 0 : i64, scratch_operands = 0 : i64, tpu.core_type = #tpu.core_type<tc>} {
    %c0 = arith.constant 0 : index
    %c0_0 = arith.constant 0 : index
    %0 = vector.load %arg0[%c0, %c0_0] : memref<2x256xf32, #tpu.memory_space<vmem>>, vector<2x256xf32>
    %c0_1 = arith.constant 0 : index
    %c0_2 = arith.constant 0 : index
    %1 = vector.load %arg1[%c0_1, %c0_2] : memref<256x64xf32, #tpu.memory_space<vmem>>, vector<256x64xf32>
    %cst = arith.constant dense<0.000000e+00> : vector<2x64xf32>
    %2 = tpu.matmul %0, %1, %cst {dimension_numbers = #tpu.dot_dimension_numbers<[1], [0], [0], [1], [0, 0, 1, 1], [], []>} : vector<2x256xf32>, vector<256x64xf32>, vector<2x64xf32> -> vector<2x64xf32>
    %c0_3 = arith.constant 0 : index
    %c0_4 = arith.constant 0 : index
    %3 = vector.load %arg2[%c0_3, %c0_4] : memref<2x64xf32, #tpu.memory_space<vmem>>, vector<2x64xf32>
    %4 = arith.addf %2, %3 : vector<2x64xf32>
    %c0_5 = arith.constant 0 : index
    %c0_6 = arith.constant 0 : index
    %5 = vector.load %arg3[%c0_5, %c0_6] : memref<2x64xf32, #tpu.memory_space<vmem>>, vector<2x64xf32>
    tpu.vector_store %arg3[%c0_5, %c0_6], %4 {strides = array<i32>} : memref<2x64xf32, #tpu.memory_space<vmem>>, vector<2x64xf32>,
    return
  }
}

</mosaic_0001>

<bundles_post_ra>
// kernel: tpu_custom_call.1
= control target key start
LH: loop header
LB: loop body
LE: loop exit
PB: predicated region body
PF: predicated region fallthrough
CT: control target
= control target key end

     0   :  { %s374_s0 = inlined_call_operand.vmem [shape: f32[2,256], index: 0, kind: input, shape index: {}]   ;;  %s375_s1 = inlined_call_operand.vmem [shape: f32[256,64], index: 1, kind: input, shape index: {}]   ;;  %s376_s2 = inlined_call_operand.vmem [shape: f32[2,64], index: 2, kind: input, shape index: {}]   ;;  %s377_s3 = inlined_call_operand.hbm [shape: f32[2,64], index: 3, kind: output, shape index: {}]  }
   0x1   :  { %v32_v0 = vld [vmem:[%s375_s1 + $0x80] sm:$0xff]  ;;  %v33_v1 = vld [vmem:[%s375_s1 + $0x88] sm:$0xff]  ;;  %v34_v5 = vld [vmem:[%s375_s1 + $0x90] sm:$0xff] }
   0x2   :  { %v16_v2 = vld [vmem:[%s375_s1] sm:$0xff]  ;;  %v182_v3 = vpack.c.bf16 %v33_v1, %v32_v0  ;;  %v17_v4 = vld [vmem:[%s375_s1 + $0x8] sm:$0xff]  ;;  %v35_v6 = vld [vmem:[%s375_s1 + $0x98] sm:$0xff] }
   0x3   :  { %v184_v7 = vpack.c.bf16 %v17_v4, %v16_v2  ;;  %v186_v8 = vpack.c.bf16 %v35_v6, %v34_v5  ;;  %v18_v9 = vld [vmem:[%s375_s1 + $0x10] sm:$0xff]  ;;  %v19_v10 = vld [vmem:[%s375_s1 + $0x18] sm:$0xff]  ;;  %v36_v11 = vld [vmem:[%s375_s1 + $0xa0] sm:$0xff] }
   0x4   :  { %183 = vmatprep.subr.bf16.mxu0 %v182_v3  ;;  %v37_v12 = vld [vmem:[%s375_s1 + $0xa8] sm:$0xff]  ;;  %v188_v13 = vpack.c.bf16 %v19_v10, %v18_v9  ;;  %v20_v15 = vld [vmem:[%s375_s1 + $0x20] sm:$0xff]  ;;  %v38_v17 = vld [vmem:[%s375_s1 + $0xb0] sm:$0xff] }
   0x5   :  { %185 = vmatpush3.bf16.msra.mxu0 %v184_v7  ;;  %v190_v14 = vpack.c.bf16 %v37_v12, %v36_v11  ;;  %v21_v16 = vld [vmem:[%s375_s1 + $0x28] sm:$0xff]  ;;  %v39_v18 = vld [vmem:[%s375_s1 + $0xb8] sm:$0xff]  ;;  %v22_v21 = vld [vmem:[%s375_s1 + $0x30] sm:$0xff] }
   0x6   :  { %187 = vmatprep.subr.bf16.mxu0 %v186_v8  ;;  %v192_v19 = vpack.c.bf16 %v21_v16, %v20_v15  ;;  %v194_v20 = vpack.c.bf16 %v39_v18, %v38_v17  ;;  %v23_v22 = vld [vmem:[%s375_s1 + $0x38] sm:$0xff]  ;;  %v40_v23 = vld [vmem:[%s375_s1 + $0xc0] sm:$0xff]  ;;  %v41_v24 = vld [vmem:[%s375_s1 + $0xc8] sm:$0xff] }
   0x7   :  { %v146_v25 = vld.sshfl [vmem:[%s374_s0] sm:$0x33 pattern:$0x76325410] }
   0x8   :  { %v57_v26 = vcombine.high %v146_v25, %v146_v25 }
   0x9   :  { %189 = vmatpush3.bf16.msra.mxu0 %v188_v13 }
   0xa   :  { %191 = vmatprep.subr.bf16.mxu0 %v190_v14 }
   0xb   :  { %8 = vsyncpa [#allocation3], 0  ;;  %v196_v27 = vpack.c.bf16 %v23_v22, %v22_v21  ;;  %v198_v28 = vpack.c.bf16 %v41_v24, %v40_v23  ;;  %v24_v29 = vld [vmem:[%s375_s1 + $0x40] sm:$0xff]  ;;  %v25_v30 = vld [vmem:[%s375_s1 + $0x48] sm:$0xff]  ;;  %124 = vmatprep.mubr.f32.mxu0 %v57_v26  ;;  %s239_s25 = smov [#allocation2]   ;;  %vm130_vm0 = vcmask 517120  }
   0xc   :  { %v42_v31 = vld [vmem:[%s375_s1 + $0xd0] sm:$0xff]  ;;  %v43_v32 = vld [vmem:[%s375_s1 + $0xd8] sm:$0xff]  ;;  %v200_v33 = vpack.c.bf16 %v25_v30, %v24_v29  ;;  %v44_v37 = vld [vmem:[%s375_s1 + $0xe0] sm:$0xff]  ;;  %s138_s26 = sshll.u32 %s239_s25, 4  ;;  %s139_s26 = int_to_ptr.vmem [resolvable:$true] %s138_s26 }
   0xd   :  { %193 = vmatpush3.bf16.msra.mxu0 %v192_v19  ;;  %v202_v34 = vpack.c.bf16 %v43_v32, %v42_v31  ;;  %v26_v35 = vld [vmem:[%s375_s1 + $0x50] sm:$0xff]  ;;  %v27_v36 = vld [vmem:[%s375_s1 + $0x58] sm:$0xff]  ;;  %v45_v38 = vld [vmem:[%s375_s1 + $0xe8] sm:$0xff]  ;;  %s215_s27 = scalar_lea.vmem %s139_s26, 32  ;;  %p220_p1 = scmp.lt.s32.totalorder %s139_s26, %s139_s26 }
   0xe   :  { %195 = vmatprep.subr.bf16.mxu0 %v194_v20  ;;  %v204_v39 = vpack.c.bf16 %v27_v36, %v26_v35  ;;  %v206_v40 = vpack.c.bf16 %v45_v38, %v44_v37  ;;  %v28_v41 = vld [vmem:[%s375_s1 + $0x60] sm:$0xff]  ;;  %v29_v42 = vld [vmem:[%s375_s1 + $0x68] sm:$0xff]  ;;  %v46_v43 = vld [vmem:[%s375_s1 + $0xf0] sm:$0xff]  ;;  %p216_p0 = scmp.ne.s32.totalorder %s139_s26, %s215_s27  ;;  %p221_p2 = scmp.lt.s32.totalorder %s215_s27, %s215_s27 }
   0xf   :  { %v47_v44 = vld [vmem:[%s375_s1 + $0xf8] sm:$0xff]  ;;  %v208_v45 = vpack.c.bf16 %v29_v42, %v28_v41  ;;  %v30_v47 = vld [vmem:[%s375_s1 + $0x70] sm:$0xff]  ;;  %v48_v51 = vld [vmem:[%s376_s2] sm:$0x3] }
  0x10   :  { %v210_v46 = vpack.c.bf16 %v47_v44, %v46_v43  ;;  %v31_v48 = vld [vmem:[%s375_s1 + $0x78] sm:$0xff]  ;;  %p222_p3 = por %p221_p2, %p220_p1 }
  0x11   :  { %197 = vmatpush3.bf16.msra.mxu0 %v196_v27  ;;  %v212_v49 = vpack.c.bf16 %v31_v48, %v30_v47 }
  0x12   :  { %199 = vmatprep.subr.bf16.mxu0 %v198_v28  ;;  %p223_p4 = pnand %p222_p3, %p216_p0 }
  0x15   :  { %201 = vmatpush3.bf16.msra.mxu0 %v200_v33 }
  0x16   :  { %203 = vmatprep.subr.bf16.mxu0 %v202_v34 }
  0x19   :  { %205 = vmatpush3.bf16.msra.mxu0 %v204_v39 }
  0x1a   :  { %207 = vmatprep.subr.bf16.mxu0 %v206_v40 }
  0x1d   :  { %209 = vmatpush3.bf16.msra.mxu0 %v208_v45 }
  0x1e   :  { %211 = vmatprep.subr.bf16.mxu0 %v210_v46 }
  0x21   :  { %213 = vmatpush3.bf16.msra.mxu0 %v212_v49 }
  0x24   :  { %125 = vmatmul.mubr.f32.vlgmr.msra.gmra.mrb[0].mxu0 %v146_v25 }
  0xf7   :  { %v179_v50 = vpop.f32.mrb[0].mxu0 }
  0xf8   :  { %v180_v52 = vpop.f32.mrb[1].mxu0 }
  0xf9   :  { %v181_v53 = vadd.f32 %v180_v52, %v179_v50 }
  0xfb   :  { %v127_v54 = vadd.f32 %v181_v53, %v48_v51 }
  0xfd   :  { %131 = vst.msk [vmem:[#allocation2] sm:$0x3] %vm130_vm0, %v127_v54 }
  0xfe   :  { %226 = shalt.err (!%p223_p4)
}
  0xff   :  { %s227_s0 = scalar_lea.hbm %s377_s3, 32 }
 0x100   :  { %p228_p5 = scmp.ne.s32.totalorder %s377_s3, %s227_s0  ;;  %p231_p6 = scmp.lt.u32.totalorder %s227_s0, %s377_s3 }
 0x102   :  { %p233_p7 = pnand %p231_p6, %p228_p5 }
 0x104   :  { %236 = shalt.err (!%p233_p7)
}
 0x105   :  { %141 = dma.vmem_to_hbm [thread:$0]  %s139_s26, 32, %s377_s3, [#allocation3]  }
 0x106   :  { %237 = dma.done.wait [#allocation3], 32  }
 0x107   :  { %238 = vsyncadd [#allocation3], 4294967264 }
 0x108   :  { %145 = vsyncpa [#allocation3], 1 }

</bundles_post_ra>
